<compile_context>
chip_gen: v7x
topology: tpu7x:2x2x1
jax: 0.10.0
libtpu: 0.0.40
codegen_flags: <defaults>
</compile_context>

<pallas_src>
import jax
import jax.numpy as jnp
from jax.experimental import pallas as pl
from jax.experimental.pallas import tpu as pltpu


def mlp_plr_kernel(x_ref, w1_ref, b1_ref, w2_ref, b2_ref, w3_ref, b3_ref, o_ref):
    # x tile arrives in natural [TB, D]; transpose on-chip to batch-on-lanes [D, TB]
    # (cheap XLU work, avoids an extra HBM read+write pass over x in the wrapper).
    x_b = x_ref[...].T.astype(jnp.bfloat16)                              # [D, TB]

    # fc1 + ReLU: [128, D] @ [D, TB] -> [128, TB]; bf16 MXU operands, f32 accumulate.
    h1 = jnp.dot(w1_ref[...], x_b, preferred_element_type=jnp.float32)
    h1 = jnp.maximum(h1 + b1_ref[...], 0.0)                              # f32 VPU

    # fc2 + ReLU: [64, 128] @ [128, TB] -> [64, TB]
    h2 = jnp.dot(w2_ref[...], h1.astype(jnp.bfloat16),
                 preferred_element_type=jnp.float32)
    h2 = jnp.maximum(h2 + b2_ref[...], 0.0)                              # f32 VPU

    # fc3 (64 -> 1) as f32 VPU multiply + sublane reduction (keeps the MXU free).
    z = jnp.sum(h2 * w3_ref[...], axis=0, keepdims=True) + b3_ref[...]   # [1, TB]

    # Exact sigmoid (exp on the EUP, exact divide). No approx reciprocal.
    o_ref[...] = (1.0 / (1.0 + jnp.exp(-z))).astype(o_ref.dtype)


def _round_up(n, m):
    return ((n + m - 1) // m) * m


def _choose_tile(batch, target=8192):
    """Pick (tile, padded_batch).

    Large tiles amortize the ~0.35us per-grid-step overhead; keep >= 2 grid steps
    when the batch is big enough so the 'parallel' axis can shard across v7x's two
    TensorCores, and round the tile so batch-padding waste stays small. target=8192
    keeps f32 temporaries well inside v7x's 64 MiB VMEM.
    """
    n_steps = max(1, -(-batch // target))        # ceil division
    if batch > 256:
        n_steps = max(n_steps, 2)
    tb = _round_up(-(-batch // n_steps), 128)    # lane-aligned tile
    return tb, n_steps * tb


def mlp_plr_forward(x, params, target_tile=8192):
    """x: [B, D] float32. params: w1 [128, D], b1 [128, 1], w2 [64, 128],
       b2 [64, 1], w3 [64, 1], b3 [1, 1] (PyTorch [out, in] weight layout)."""
    B, D = x.shape
    tb, b_pad = _choose_tile(B, target_tile)
    x_p = x if b_pad == B else jnp.pad(x, ((0, b_pad - B), (0, 0)))

    # MXU operands in bf16 (accumulation stays f32 in-kernel); biases / fc3 stay f32.
    w1 = params["w1"].astype(jnp.bfloat16)
    w2 = params["w2"].astype(jnp.bfloat16)

    flops = 2 * (D * 128 + 128 * 64 + 64) * b_pad
    bytes_accessed = (b_pad * D + b_pad) * 4 + (128 * D + 64 * 128) * 2 + (128 + 64 + 64 + 1) * 4

    out = pl.pallas_call(
        mlp_plr_kernel,
        out_shape=jax.ShapeDtypeStruct((1, b_pad), jnp.float32),
        grid=(b_pad // tb,),
        in_specs=[
            pl.BlockSpec((tb, D), lambda i: (i, 0)),       # x tile (streamed)
            pl.BlockSpec((128, D), lambda i: (0, 0)),      # w1 (VMEM-resident, bf16)
            pl.BlockSpec((128, 1), lambda i: (0, 0)),      # b1 (f32)
            pl.BlockSpec((64, 128), lambda i: (0, 0)),     # w2 (bf16)
            pl.BlockSpec((64, 1), lambda i: (0, 0)),       # b2 (f32)
            pl.BlockSpec((64, 1), lambda i: (0, 0)),       # w3 (f32)
            pl.BlockSpec((1, 1), lambda i: (0, 0)),        # b3 (f32)
        ],
        out_specs=pl.BlockSpec((1, tb), lambda i: (0, i)), # lane-dense output row
        compiler_params=pltpu.CompilerParams(
            dimension_semantics=("parallel",),
            vmem_limit_bytes=48 * 1024 * 1024,             # <= v7x 64 MiB physical
        ),
        cost_estimate=pl.CostEstimate(
            flops=flops, transcendentals=b_pad, bytes_accessed=bytes_accessed),
    )(x_p, w1, params["b1"], w2, params["b2"], params["w3"], params["b3"])

    return out[0, :B].reshape(B, 1)


def init_params(key, input_dim):
    """nn.Linear-style uniform(-1/sqrt(fan_in), 1/sqrt(fan_in)) init, [out, in] layout."""
    ks = jax.random.split(key, 6)

    def linear(kw, kb, fan_in, fan_out):
        bound = 1.0 / (float(fan_in) ** 0.5)
        w = jax.random.uniform(kw, (fan_out, fan_in), jnp.float32, -bound, bound)
        b = jax.random.uniform(kb, (fan_out, 1), jnp.float32, -bound, bound)
        return w, b

    w1, b1 = linear(ks[0], ks[1], input_dim, 128)
    w2, b2 = linear(ks[2], ks[3], 128, 64)
    w3t, b3 = linear(ks[4], ks[5], 64, 1)            # w3t: [1, 64], b3: [1, 1]
    return dict(w1=w1, b1=b1, w2=w2, b2=b2, w3=w3t.T, b3=b3)


def mlp_plr_reference_f32(x, p):
    """Pure f32 reference (matches the PyTorch module's math)."""
    h1 = jnp.maximum(x @ p["w1"].T + p["b1"].T, 0.0)
    h2 = jnp.maximum(h1 @ p["w2"].T + p["b2"].T, 0.0)
    return jax.nn.sigmoid(h2 @ p["w3"] + p["b3"])


def mlp_plr_reference_mixed(x, p):
    """Reference that mirrors the kernel's precision (bf16 MXU operands, f32 accum)."""
    xb = x.astype(jnp.bfloat16)
    w1b = p["w1"].astype(jnp.bfloat16)
    w2b = p["w2"].astype(jnp.bfloat16)
    h1 = jnp.dot(xb, w1b.T, preferred_element_type=jnp.float32) + p["b1"].T
    h1 = jnp.maximum(h1, 0.0)
    h2 = jnp.dot(h1.astype(jnp.bfloat16), w2b.T,
                 preferred_element_type=jnp.float32) + p["b2"].T
    h2 = jnp.maximum(h2, 0.0)
    z = h2 @ p["w3"] + p["b3"]
    return 1.0 / (1.0 + jnp.exp(-z))


if __name__ == "__main__":
    key = jax.random.PRNGKey(0)
    k_x, k_p = jax.random.split(key)

    batch, input_dim = 8, 16
    x = jax.random.normal(k_x, (batch, input_dim), jnp.float32)
    params = init_params(k_p, input_dim)

    out = jax.block_until_ready(mlp_plr_forward(x, params))
    ref_mixed = mlp_plr_reference_mixed(x, params)
    ref_f32 = mlp_plr_reference_f32(x, params)

    assert out.shape == (batch, 1)
    # Exact match (up to accumulation order) against the precision-matched reference.
    assert jnp.allclose(out, ref_mixed, atol=1e-4, rtol=1e-4), (out, ref_mixed)
    # Sanity vs. the pure-f32 module math (only deviation: bf16 MXU operands).
    assert jnp.allclose(out, ref_f32, atol=1e-2, rtol=1e-2), (out, ref_f32)

    print("KERNEL_OK")
</pallas_src>

<mosaic_0001>
module attributes {stable_mosaic.version = 11 : i64} {
  func.func @mlp_plr_kernel(%arg0: i32, %arg1: memref<128x16xf32, #tpu.memory_space<vmem>>, %arg2: memref<128x16xbf16, #tpu.memory_space<vmem>>, %arg3: memref<128x1xf32, #tpu.memory_space<vmem>>, %arg4: memref<64x128xbf16, #tpu.memory_space<vmem>>, %arg5: memref<64x1xf32, #tpu.memory_space<vmem>>, %arg6: memref<64x1xf32, #tpu.memory_space<vmem>>, %arg7: memref<1x1xf32, #tpu.memory_space<vmem>>, %arg8: memref<1x128xf32, #tpu.memory_space<vmem>>) attributes {dimension_semantics = [#tpu.dimension_semantics<parallel>], iteration_bounds = array<i64: 1>, scalar_prefetch = 0 : i64, scratch_operands = 0 : i64, tpu.core_type = #tpu.core_type<tc>, window_params = [{transform_indices = @transform_0, window_bounds = array<i64: 128, 16>}, {pipeline_mode = #tpu.pipeline_mode<synchronous>, transform_indices = @transform_1, window_bounds = array<i64: 128, 16>}, {pipeline_mode = #tpu.pipeline_mode<synchronous>, transform_indices = @transform_2, window_bounds = array<i64: 128, 1>}, {pipeline_mode = #tpu.pipeline_mode<synchronous>, transform_indices = @transform_3, window_bounds = array<i64: 64, 128>}, {pipeline_mode = #tpu.pipeline_mode<synchronous>, transform_indices = @transform_4, window_bounds = array<i64: 64, 1>}, {pipeline_mode = #tpu.pipeline_mode<synchronous>, transform_indices = @transform_5, window_bounds = array<i64: 64, 1>}, {pipeline_mode = #tpu.pipeline_mode<synchronous>, transform_indices = @transform_6, window_bounds = array<i64: 1, 1>}, {transform_indices = @transform_7, window_bounds = array<i64: 1, 128>}]} {
    %c0 = arith.constant 0 : index
    %c0_0 = arith.constant 0 : index
    %0 = vector.load %arg1[%c0, %c0_0] : memref<128x16xf32, #tpu.memory_space<vmem>>, vector<128x16xf32>
    %1 = tpu.transpose %0, [1, 0] : vector<128x16xf32> -> vector<16x128xf32>
    %2 = arith.truncf %1 : vector<16x128xf32> to vector<16x128xbf16>
    %c0_1 = arith.constant 0 : index
    %c0_2 = arith.constant 0 : index
    %3 = vector.load %arg2[%c0_1, %c0_2] : memref<128x16xbf16, #tpu.memory_space<vmem>>, vector<128x16xbf16>
    %cst = arith.constant dense<0.000000e+00> : vector<128x128xf32>
    %4 = tpu.matmul %3, %2, %cst {dimension_numbers = #tpu.dot_dimension_numbers<[1], [0], [0], [1], [0, 0, 1, 1], [], []>} : vector<128x16xbf16>, vector<16x128xbf16>, vector<128x128xf32> -> vector<128x128xf32>
    %c0_3 = arith.constant 0 : index
    %c0_4 = arith.constant 0 : index
    %5 = vector.load %arg3[%c0_3, %c0_4] : memref<128x1xf32, #tpu.memory_space<vmem>>, vector<128x1xf32>
    %6 = vector.broadcast %5 : vector<128x1xf32> to vector<128x128xf32>
    %7 = arith.addf %4, %6 : vector<128x128xf32>
    %cst_5 = arith.constant 0.000000e+00 : f32
    %8 = vector.broadcast %cst_5 : f32 to vector<128x128xf32>
    %9 = arith.maximumf %7, %8 : vector<128x128xf32>
    %c0_6 = arith.constant 0 : index
    %c0_7 = arith.constant 0 : index
    %10 = vector.load %arg4[%c0_6, %c0_7] : memref<64x128xbf16, #tpu.memory_space<vmem>>, vector<64x128xbf16>
    %11 = arith.truncf %9 : vector<128x128xf32> to vector<128x128xbf16>
    %cst_8 = arith.constant dense<0.000000e+00> : vector<64x128xf32>
    %12 = tpu.matmul %10, %11, %cst_8 {dimension_numbers = #tpu.dot_dimension_numbers<[1], [0], [0], [1], [0, 0, 1, 1], [], []>} : vector<64x128xbf16>, vector<128x128xbf16>, vector<64x128xf32> -> vector<64x128xf32>
    %c0_9 = arith.constant 0 : index
    %c0_10 = arith.constant 0 : index
    %13 = vector.load %arg5[%c0_9, %c0_10] : memref<64x1xf32, #tpu.memory_space<vmem>>, vector<64x1xf32>
    %14 = vector.broadcast %13 : vector<64x1xf32> to vector<64x128xf32>
    %15 = arith.addf %12, %14 : vector<64x128xf32>
    %cst_11 = arith.constant 0.000000e+00 : f32
    %16 = vector.broadcast %cst_11 : f32 to vector<64x128xf32>
    %17 = arith.maximumf %15, %16 : vector<64x128xf32>
    %c0_12 = arith.constant 0 : index
    %c0_13 = arith.constant 0 : index
    %18 = vector.load %arg6[%c0_12, %c0_13] : memref<64x1xf32, #tpu.memory_space<vmem>>, vector<64x1xf32>
    %19 = vector.broadcast %18 : vector<64x1xf32> to vector<64x128xf32>
    %20 = arith.mulf %17, %19 : vector<64x128xf32>
    %cst_14 = arith.constant dense<0.000000e+00> : vector<128xf32>
    %21 = vector.multi_reduction <add>, %20, %cst_14 [0] : vector<64x128xf32> to vector<128xf32>
    %22 = vector.shape_cast %21 : vector<128xf32> to vector<1x128xf32>
    %c0_15 = arith.constant 0 : index
    %c0_16 = arith.constant 0 : index
    %23 = vector.load %arg7[%c0_15, %c0_16] : memref<1x1xf32, #tpu.memory_space<vmem>>, vector<1x1xf32>
    %24 = vector.broadcast %23 : vector<1x1xf32> to vector<1x128xf32>
    %25 = arith.addf %22, %24 : vector<1x128xf32>
    %cst_17 = arith.constant 0.000000e+00 : f32
    %26 = vector.broadcast %cst_17 : f32 to vector<1x128xf32>
    %27 = arith.subf %26, %25 : vector<1x128xf32>
    %28 = math.exp %27 : vector<1x128xf32>
    %cst_18 = arith.constant 1.000000e+00 : f32
    %29 = vector.broadcast %cst_18 : f32 to vector<1x128xf32>
    %30 = arith.addf %29, %28 : vector<1x128xf32>
    %cst_19 = arith.constant 1.000000e+00 : f32
    %31 = vector.broadcast %cst_19 : f32 to vector<1x128xf32>
    %32 = arith.divf %31, %30 : vector<1x128xf32>
    %c0_20 = arith.constant 0 : index
    %c0_21 = arith.constant 0 : index
    %33 = vector.load %arg8[%c0_20, %c0_21] : memref<1x128xf32, #tpu.memory_space<vmem>>, vector<1x128xf32>
    tpu.vector_store %arg8[%c0_20, %c0_21], %32 {strides = array<i32>} : memref<1x128xf32, #tpu.memory_space<vmem>>, vector<1x128xf32>,
    return
  }
  func.func @transform_0(%arg0: i32) -> (i32, i32) {
    %c0_i32 = arith.constant 0 : i32
    %c0_i32_0 = arith.constant 0 : i32
    return %arg0, %c0_i32 : i32, i32
  }
  func.func @transform_1(%arg0: i32) -> (i32, i32) {
    %c0_i32 = arith.constant 0 : i32
    %c0_i32_0 = arith.constant 0 : i32
    %c0_i32_1 = arith.constant 0 : i32
    return %c0_i32, %c0_i32_0 : i32, i32
  }
  func.func @transform_2(%arg0: i32) -> (i32, i32) {
    %c0_i32 = arith.constant 0 : i32
    %c0_i32_0 = arith.constant 0 : i32
    %c0_i32_1 = arith.constant 0 : i32
    return %c0_i32, %c0_i32_0 : i32, i32
  }
  func.func @transform_3(%arg0: i32) -> (i32, i32) {
    %c0_i32 = arith.constant 0 : i32
    %c0_i32_0 = arith.constant 0 : i32
    %c0_i32_1 = arith.constant 0 : i32
    return %c0_i32, %c0_i32_0 : i32, i32
  }
  func.func @transform_4(%arg0: i32) -> (i32, i32) {
    %c0_i32 = arith.constant 0 : i32
    %c0_i32_0 = arith.constant 0 : i32
    %c0_i32_1 = arith.constant 0 : i32
    return %c0_i32, %c0_i32_0 : i32, i32
  }
  func.func @transform_5(%arg0: i32) -> (i32, i32) {
    %c0_i32 = arith.constant 0 : i32
    %c0_i32_0 = arith.constant 0 : i32
    %c0_i32_1 = arith.constant 0 : i32
    return %c0_i32, %c0_i32_0 : i32, i32
  }
  func.func @transform_6(%arg0: i32) -> (i32, i32) {
    %c0_i32 = arith.constant 0 : i32
    %c0_i32_0 = arith.constant 0 : i32
    %c0_i32_1 = arith.constant 0 : i32
    return %c0_i32, %c0_i32_0 : i32, i32
  }
  func.func @transform_7(%arg0: i32) -> (i32, i32) {
    %c0_i32 = arith.constant 0 : i32
    %c0_i32_0 = arith.constant 0 : i32
    return %c0_i32, %arg0 : i32, i32
  }
}

</mosaic_0001>

<bundles_post_ra>
// kernel: tpu_custom_call.1
= control target key start
LH: loop header
LB: loop body
LE: loop exit
PB: predicated region body
PF: predicated region fallthrough
CT: control target
= control target key end

     0   :  { %s1021_s0 = inlined_call_operand.vmem [shape: f32[128,16], index: 0, kind: input, shape index: {}]   ;;  %s1022_s1 = inlined_call_operand.vmem [shape: bf16[128,16], index: 1, kind: input, shape index: {}]   ;;  %s1023_s2 = inlined_call_operand.vmem [shape: f32[128,1], index: 2, kind: input, shape index: {}]   ;;  %s1024_s3 = inlined_call_operand.vmem [shape: bf16[64,128], index: 3, kind: input, shape index: {}]   ;;  %s1025_s4 = inlined_call_operand.vmem [shape: f32[64,1], index: 4, kind: input, shape index: {}]   ;;  %s1026_s5 = inlined_call_operand.vmem [shape: f32[64,1], index: 5, kind: input, shape index: {}]   ;;  %s1027_s6 = inlined_call_operand.<no memory space> [shape: f32[1,1], index: 6, kind: input, shape index: {}]   ;;  %s1028_s7 = inlined_call_operand.hbm [shape: f32[1,128], index: 7, kind: output, shape index: {}]  }
   0x1   :  { %v12_v0 = vstv %s1027_s6 }
   0x2   :  { %13 = vst [vmem:[#allocation2] sm:$0x1] %v12_v0 }
   0x3   :  { %v30_v1 = vld [vmem:[%s1021_s0] sm:$0xff]  ;;  %v774_v2 = vmov 0   ;;  %v31_v3 = vld [vmem:[%s1021_s0 + $0x8] sm:$0xff]  ;;  %v32_v5 = vld [vmem:[%s1021_s0 + $0x10] sm:$0xff]  ;;  %vm231_vm0 = vcmask 130048  }
   0x4   :  { %46 = vxpose.xlu0.b32.start [1/16] (narrow) %v30_v1, 16  ;;  %732 = vset.pattern.permute.xlu1 %v774_v2  ;;  %v95_v4 = vld [vmem:[%s1023_s2] sm:$0xff]  ;;  %v96_v6 = vld [vmem:[%s1023_s2 + $0x8] sm:$0xff]  ;;  %v33_v7 = vld [vmem:[%s1021_s0 + $0x18] sm:$0xff] }
   0x5   :  { %113 = vperm.xlu1 %732, %v95_v4   ;;  %v97_v8 = vld [vmem:[%s1023_s2 + $0x10] sm:$0xff]  ;;  %v734_v9 = vld [vmem:[%s1022_s1] sm:$0xff]   ;;  %v98_v11 = vld [vmem:[%s1023_s2 + $0x18] sm:$0xff] }
   0x6   :  { %v34_v10 = vld [vmem:[%s1021_s0 + $0x20] sm:$0xff]  ;;  %674 = vmatprep.mubr.msk.bf16.mxu0 %vm231_vm0, %v734_v9  ;;  %v35_v12 = vld [vmem:[%s1021_s0 + $0x28] sm:$0xff]  ;;  %v36_v14 = vld [vmem:[%s1021_s0 + $0x30] sm:$0xff] }
   0x7   :  { %v99_v13 = vld [vmem:[%s1023_s2 + $0x20] sm:$0xff] }
   0x8   :  { %47 = vxpose.xlu0.b32.cont [2/16] (narrow) %v31_v3, 16 }
   0x9   :  { %118 = vperm.xlu1 %732, %v96_v6  }
   0xc   :  { %48 = vxpose.xlu0.b32.cont [3/16] (narrow) %v32_v5, 16 }
   0xd   :  { %123 = vperm.xlu1 %732, %v97_v8  }
  0x10   :  { %49 = vxpose.xlu0.b32.cont [4/16] (narrow) %v33_v7, 16 }
  0x11   :  { %128 = vperm.xlu1 %732, %v98_v11  }
  0x14   :  { %50 = vxpose.xlu0.b32.cont [5/16] (narrow) %v34_v10, 16 }
  0x15   :  { %133 = vperm.xlu1 %732, %v99_v13  }
  0x18   :  { %51 = vxpose.xlu0.b32.cont [6/16] (narrow) %v35_v12, 16 }
  0x19   :  { %14 = vsyncpa [#allocation4], 0  ;;  %v100_v15 = vld [vmem:[%s1023_s2 + $0x28] sm:$0xff]  ;;  %v37_v16 = vld [vmem:[%s1021_s0 + $0x38] sm:$0xff] }
  0x1a   :  { %138 = vperm.xlu1 %732, %v100_v15   ;;  %v101_v17 = vld [vmem:[%s1023_s2 + $0x30] sm:$0xff]  ;;  %v38_v18 = vld [vmem:[%s1021_s0 + $0x40] sm:$0xff]  ;;  %v102_v19 = vld [vmem:[%s1023_s2 + $0x38] sm:$0xff] }
  0x1b   :  { %v39_v20 = vld [vmem:[%s1021_s0 + $0x48] sm:$0xff]  ;;  %v103_v21 = vld [vmem:[%s1023_s2 + $0x40] sm:$0xff]  ;;  %v40_v22 = vld [vmem:[%s1021_s0 + $0x50] sm:$0xff] }
  0x1c   :  { %52 = vxpose.xlu0.b32.cont [7/16] (narrow) %v36_v14, 16  ;;  %v104_v23 = vld [vmem:[%s1023_s2 + $0x48] sm:$0xff]  ;;  %v41_v24 = vld [vmem:[%s1021_s0 + $0x58] sm:$0xff]  ;;  %v105_v25 = vld [vmem:[%s1023_s2 + $0x50] sm:$0xff] }
  0x1d   :  { %v42_v26 = vld [vmem:[%s1021_s0 + $0x60] sm:$0xff]  ;;  %v106_v27 = vld [vmem:[%s1023_s2 + $0x58] sm:$0xff]  ;;  %v43_v28 = vld [vmem:[%s1021_s0 + $0x68] sm:$0xff] }
  0x1e   :  { %143 = vperm.xlu1 %732, %v101_v17   ;;  %v107_v29 = vld [vmem:[%s1023_s2 + $0x60] sm:$0xff]  ;;  %v44_v30 = vld [vmem:[%s1021_s0 + $0x70] sm:$0xff]  ;;  %v108_v31 = vld [vmem:[%s1023_s2 + $0x68] sm:$0xff] }
  0x1f   :  { %v45_v32 = vld [vmem:[%s1021_s0 + $0x78] sm:$0xff]  ;;  %v109_v33 = vld [vmem:[%s1023_s2 + $0x70] sm:$0xff]  ;;  %v386_v35 = vld [vmem:[%s1025_s4 + $0x8] sm:$0xff] }
  0x20   :  { %53 = vxpose.xlu0.b32.cont [8/16] (narrow) %v37_v16, 16  ;;  %v110_v34 = vld [vmem:[%s1023_s2 + $0x78] sm:$0xff]  ;;  %v387_v36 = vld [vmem:[%s1025_s4 + $0x10] sm:$0xff]  ;;  %v530_v38 = vld [vmem:[%s1026_s5] sm:$0xff] }
  0x21   :  { %v388_v37 = vld [vmem:[%s1025_s4 + $0x18] sm:$0xff]  ;;  %v531_v39 = vld [vmem:[%s1026_s5 + $0x8] sm:$0xff]  ;;  %v389_v40 = vld [vmem:[%s1025_s4 + $0x20] sm:$0xff] }
  0x22   :  { %148 = vperm.xlu1 %732, %v102_v19   ;;  %v532_v41 = vld [vmem:[%s1026_s5 + $0x10] sm:$0xff]  ;;  %v390_v42 = vld [vmem:[%s1025_s4 + $0x28] sm:$0xff]  ;;  %v533_v43 = vld [vmem:[%s1026_s5 + $0x18] sm:$0xff] }
  0x23   :  { %v391_v44 = vld [vmem:[%s1025_s4 + $0x30] sm:$0xff]  ;;  %v534_v45 = vld [vmem:[%s1026_s5 + $0x20] sm:$0xff]  ;;  %v535_v46 = vld [vmem:[%s1026_s5 + $0x28] sm:$0xff] }
  0x24   :  { %54 = vxpose.xlu0.b32.cont [9/16] (narrow) %v38_v18, 16  ;;  %v537_v47 = vld [vmem:[%s1026_s5 + $0x38] sm:$0xff]  ;;  %v735_v51 = vld [vmem:[%s1022_s1 + $0x8] sm:$0xff]   ;;  %v736_v52 = vld [vmem:[%s1022_s1 + $0x10] sm:$0xff]  }
  0x25   :  { %v737_v53 = vld [vmem:[%s1022_s1 + $0x18] sm:$0xff]   ;;  %v738_v54 = vld [vmem:[%s1022_s1 + $0x20] sm:$0xff]   ;;  %v739_v55 = vld [vmem:[%s1022_s1 + $0x28] sm:$0xff]  }
  0x26   :  { %153 = vperm.xlu1 %732, %v103_v21   ;;  %v740_v56 = vld [vmem:[%s1022_s1 + $0x30] sm:$0xff]   ;;  %v741_v57 = vld [vmem:[%s1022_s1 + $0x38] sm:$0xff]   ;;  %v742_v58 = vld [vmem:[%s1024_s3] sm:$0xff]  }
  0x27   :  { %v743_v59 = vld [vmem:[%s1024_s3 + $0x10] sm:$0xff]   ;;  %v385_v60 = vld [vmem:[%s1025_s4] sm:$0xff]  ;;  %v392_v61 = vld [vmem:[%s1025_s4 + $0x38] sm:$0xff] }
  0x28   :  { %55 = vxpose.xlu0.b32.cont [10/16] (narrow) %v39_v20, 16  ;;  %710 = vmatprep.mubr.bf16.mxu1 %v743_v59  ;;  %v536_v62 = vld [vmem:[%s1026_s5 + $0x30] sm:$0xff]  ;;  %v599_v63 = vld [vmem:[#allocation2] sm:$0x1] }
  0x2a   :  { %158 = vperm.xlu1 %732, %v104_v23  }
  0x2c   :  { %56 = vxpose.xlu0.b32.cont [11/16] (narrow) %v40_v22, 16 }
  0x2e   :  { %163 = vperm.xlu1 %732, %v105_v25  }
  0x30   :  { %57 = vxpose.xlu0.b32.cont [12/16] (narrow) %v41_v24, 16 }
  0x32   :  { %168 = vperm.xlu1 %732, %v106_v27  }
  0x34   :  { %58 = vxpose.xlu0.b32.cont [13/16] (narrow) %v42_v26, 16 }
  0x36   :  { %173 = vperm.xlu1 %732, %v107_v29  }
  0x38   :  { %59 = vxpose.xlu0.b32.cont [14/16] (narrow) %v43_v28, 16 }
  0x3a   :  { %178 = vperm.xlu1 %732, %v108_v31  }
  0x3c   :  { %60 = vxpose.xlu0.b32.cont [15/16] (narrow) %v44_v30, 16 }
  0x3e   :  { %183 = vperm.xlu1 %732, %v109_v33  }
  0x40   :  { %61 = vxpose.xlu0.b32.end [16/16] (narrow) %v45_v32, 16 }
  0x42   :  { %188 = vperm.xlu1 %732, %v110_v34  }
  0x46   :  { %400 = vperm.xlu1 %732, %v386_v35  }
  0x4a   :  { %405 = vperm.xlu1 %732, %v387_v36  }
  0x4e   :  { %410 = vperm.xlu1 %732, %v388_v37  }
  0x52   :  { %540 = vperm.xlu1 %732, %v530_v38  }
  0x56   :  { %545 = vperm.xlu1 %732, %v531_v39  }
  0x5a   :  { %415 = vperm.xlu1 %732, %v389_v40  }
  0x5e   :  { %550 = vperm.xlu1 %732, %v532_v41  }
  0x62   :  { %420 = vperm.xlu1 %732, %v390_v42  }
  0x66   :  { %555 = vperm.xlu1 %732, %v533_v43  }
  0x69   :  { %733 = vset.pattern.permute.xlu0 %v774_v2 }
  0x6a   :  { %425 = vperm.xlu1 %732, %v391_v44   ;;  %395 = vperm.xlu0 %733, %v385_v60  }
  0x6e   :  { %560 = vperm.xlu1 %732, %v534_v45   ;;  %430 = vperm.xlu0 %733, %v392_v61  }
  0x72   :  { %565 = vperm.xlu1 %732, %v535_v46   ;;  %570 = vperm.xlu0 %733, %v536_v62  }
  0x76   :  { %575 = vperm.xlu1 %732, %v537_v47   ;;  %602 = vperm.xlu0 %733, %v599_v63  }
  0x84   :  { %v62_v48 = vpop.trf.xlu0  ;;  %v114_v0 = vpop.permute.xlu1 %113 }
  0x88   :  { %v63_v49 = vpop.trf.xlu0  ;;  %v119_v1 = vpop.permute.xlu1 %118 }
  0x89   :  { %v78_v50 = vpack.c.bf16 %v63_v49, %v62_v48 }
  0x8b   :  { %672 = vmatprep.subr.bf16.mxu0 %v78_v50 }
  0x8c   :  { %673 = vmatpush3.bf16.msra.mxu0 %v78_v50  ;;  %v124_v2 = vpop.permute.xlu1 %123 }
  0x8f   :  { %675 = vmatmul.mubr.msk.bf16.vlgmr.msra.gmra.mrb[0].mxu0 %vm231_vm0, %v735_v51 }
  0x90   :  { %678 = vmatprep.mubr.msk.bf16.mxu0 %vm231_vm0, %v736_v52  ;;  %v129_v3 = vpop.permute.xlu1 %128 }
  0x94   :  { %v134_v4 = vpop.permute.xlu1 %133 }
  0x97   :  { %679 = vmatmul.mubr.msk.bf16.gmra.mrb[4].mxu0 %vm231_vm0, %v737_v53 }
  0x98   :  { %682 = vmatprep.mubr.msk.bf16.mxu0 %vm231_vm0, %v738_v54 }
  0x99   :  { %v139_v5 = vpop.permute.xlu1 %138 }
  0x9d   :  { %v144_v6 = vpop.permute.xlu1 %143 }
  0x9f   :  { %683 = vmatmul.mubr.msk.bf16.gmra.mrb[8].mxu0 %vm231_vm0, %v739_v55 }
  0xa0   :  { %686 = vmatprep.mubr.msk.bf16.mxu0 %vm231_vm0, %v740_v56 }
  0xa1   :  { %v149_v7 = vpop.permute.xlu1 %148 }
  0xa5   :  { %v154_v8 = vpop.permute.xlu1 %153 }
  0xa7   :  { %687 = vmatmul.mubr.msk.bf16.gmra.mrb[12].mxu0 %vm231_vm0, %v741_v57 }
  0xa8   :  { %706 = vmatprep.mubr.bf16.mxu0 %v742_v58 }
  0xa9   :  { %v159_v9 = vpop.permute.xlu1 %158 }
  0xad   :  { %v164_v10 = vpop.permute.xlu1 %163 }
  0xb1   :  { %v169_v14 = vpop.permute.xlu1 %168 }
  0xb5   :  { %v174_v25 = vpop.permute.xlu1 %173 }
  0xb9   :  { %v179_v37 = vpop.permute.xlu1 %178 }
  0xbd   :  { %v184_v49 = vpop.permute.xlu1 %183 }
  0xc1   :  { %v189_v60 = vpop.permute.xlu1 %188 }
 0x162   :  { %v676_v11 = vpop.f32.mrb[0].mxu0 }
 0x163   :  { %v299_v12 = vadd.f32 %v676_v11, %v124_v2  ;;  %v290_v13 = vpop.f32.mrb[1].mxu0 }
 0x164   :  { %v291_v15 = vadd.f32 %v290_v13, %v114_v0  ;;  %v677_v16 = vpop.f32.mrb[2].mxu0 }
 0x165   :  { %v302_v17 = vadd.f32 %v677_v16, %v129_v3  ;;  %v293_v18 = vpop.f32.mrb[3].mxu0  ;;  %v355_v20 = vmax.f32 %v299_v12, 0.0 }
 0x166   :  { %v294_v19 = vadd.f32 %v293_v18, %v119_v1  ;;  %v353_v22 = vmax.f32 %v291_v15, 0.0 }
 0x167   :  { %v356_v21 = vmax.f32 %v302_v17, 0.0 }
 0x168   :  { %v354_v23 = vmax.f32 %v294_v19, 0.0 }
 0x169   :  { %v378_v24 = vpack.c.bf16 %v356_v21, %v355_v20  ;;  %v396_v20 = vpop.permute.xlu0 %395 }
 0x16a   :  { %v377_v26 = vpack.c.bf16 %v354_v23, %v353_v22  ;;  %v680_v27 = vpop.f32.mrb[4].mxu0 }
 0x16b   :  { %v315_v28 = vadd.f32 %v680_v27, %v144_v6  ;;  %v306_v29 = vpop.f32.mrb[5].mxu0 }
 0x16c   :  { %v307_v30 = vadd.f32 %v306_v29, %v134_v4  ;;  %v681_v31 = vpop.f32.mrb[6].mxu0  ;;  %690 = vmatprep.subr.bf16.mxu0 %v377_v26  ;;  %714 = vmatprep.subr.bf16.mxu1 %v377_v26 }
 0x16d   :  { %v318_v32 = vadd.f32 %v681_v31, %v149_v7  ;;  %v309_v33 = vpop.f32.mrb[7].mxu0  ;;  %691 = vmatpush3.bf16.msra.mxu0 %v377_v26  ;;  %722 = vmatpush3.bf16.msra.mxu1 %v377_v26  ;;  %v359_v35 = vmax.f32 %v315_v28, 0.0 }
 0x16e   :  { %v310_v34 = vadd.f32 %v309_v33, %v139_v5  ;;  %692 = vmatprep.subr.bf16.mxu0 %v378_v24  ;;  %715 = vmatprep.subr.bf16.mxu1 %v378_v24  ;;  %v357_v38 = vmax.f32 %v307_v30, 0.0 }
 0x16f   :  { %v360_v36 = vmax.f32 %v318_v32, 0.0 }
 0x170   :  { %v358_v39 = vmax.f32 %v310_v34, 0.0 }
 0x171   :  { %v380_v40 = vpack.c.bf16 %v360_v36, %v359_v35  ;;  %693 = vmatpush3.bf16.msra.mxu0 %v378_v24  ;;  %723 = vmatpush3.bf16.msra.mxu1 %v378_v24 }
 0x172   :  { %v379_v41 = vpack.c.bf16 %v358_v39, %v357_v38  ;;  %v684_v42 = vpop.f32.mrb[8].mxu0 }
 0x173   :  { %v331_v43 = vadd.f32 %v684_v42, %v164_v10  ;;  %v322_v44 = vpop.f32.mrb[9].mxu0  ;;  %v401_v10 = vpop.permute.xlu1 %400 }
 0x174   :  { %v323_v45 = vadd.f32 %v322_v44, %v154_v8  ;;  %v685_v46 = vpop.f32.mrb[10].mxu0  ;;  %694 = vmatprep.subr.bf16.mxu0 %v379_v41  ;;  %716 = vmatprep.subr.bf16.mxu1 %v379_v41  ;;  %v744_v8 = vld [vmem:[%s1024_s3 + $0x8] sm:$0xff]  }
 0x175   :  { %v334_v47 = vadd.f32 %v685_v46, %v169_v14  ;;  %v325_v48 = vpop.f32.mrb[11].mxu0  ;;  %695 = vmatpush3.bf16.msra.mxu0 %v379_v41  ;;  %724 = vmatpush3.bf16.msra.mxu1 %v379_v41  ;;  %v363_v51 = vmax.f32 %v331_v43, 0.0  ;;  %v431_v46 = vpop.permute.xlu0 %430 }
 0x176   :  { %v326_v50 = vadd.f32 %v325_v48, %v159_v9  ;;  %696 = vmatprep.subr.bf16.mxu0 %v380_v40  ;;  %717 = vmatprep.subr.bf16.mxu1 %v380_v40  ;;  %v361_v53 = vmax.f32 %v323_v45, 0.0  ;;  %v745_v9 = vld [vmem:[%s1024_s3 + $0x18] sm:$0xff]   ;;  %s775_s3 = smov [#allocation3]  }
 0x177   :  { %v364_v52 = vmax.f32 %v334_v47, 0.0  ;;  %v406_v11 = vpop.permute.xlu1 %405  ;;  %s623_s19 = sshll.u32 %s775_s3, 4  ;;  %s624_s19 = int_to_ptr.vmem [resolvable:$true] %s623_s19 }
 0x178   :  { %v362_v54 = vmax.f32 %v326_v50, 0.0  ;;  %s750_s20 = scalar_lea.vmem %s624_s19, 16  ;;  %s754_s21 = scalar_lea.vmem %s624_s19, 32 }
 0x179   :  { %v382_v55 = vpack.c.bf16 %v364_v52, %v363_v51  ;;  %697 = vmatpush3.bf16.msra.mxu0 %v380_v40  ;;  %725 = vmatpush3.bf16.msra.mxu1 %v380_v40  ;;  %p751_p0 = scmp.ne.s32.totalorder %s624_s19, %s750_s20  ;;  %p755_p1 = scmp.lt.s32.totalorder %s624_s19, %s624_s19 }
 0x17a   :  { %v381_v56 = vpack.c.bf16 %v362_v54, %v361_v53  ;;  %v688_v57 = vpop.f32.mrb[12].mxu0  ;;  %p756_p2 = scmp.lt.s32.totalorder %s754_s21, %s750_s20 }
 0x17b   :  { %v347_v58 = vadd.f32 %v688_v57, %v184_v49  ;;  %v338_v59 = vpop.f32.mrb[13].mxu0  ;;  %v411_v12 = vpop.permute.xlu1 %410 }
 0x17c   :  { %v339_v61 = vadd.f32 %v338_v59, %v174_v25  ;;  %v689_v62 = vpop.f32.mrb[14].mxu0  ;;  %698 = vmatprep.subr.bf16.mxu0 %v381_v56  ;;  %718 = vmatprep.subr.bf16.mxu1 %v381_v56  ;;  %p757_p3 = por %p756_p2, %p755_p1 }
 0x17d   :  { %v350_v63 = vadd.f32 %v689_v62, %v189_v60  ;;  %v341_v0 = vpop.f32.mrb[15].mxu0  ;;  %699 = vmatpush3.bf16.msra.mxu0 %v381_v56  ;;  %726 = vmatpush3.bf16.msra.mxu1 %v381_v56  ;;  %v367_v2 = vmax.f32 %v347_v58, 0.0  ;;  %v571_v58 = vpop.permute.xlu0 %570 }
 0x17e   :  { %v342_v1 = vadd.f32 %v341_v0, %v179_v37  ;;  %700 = vmatprep.subr.bf16.mxu0 %v382_v55  ;;  %719 = vmatprep.subr.bf16.mxu1 %v382_v55  ;;  %v365_v4 = vmax.f32 %v339_v61, 0.0  ;;  %p758_p4 = pnand %p757_p3, %p751_p0 }
 0x17f   :  { %v368_v3 = vmax.f32 %v350_v63, 0.0  ;;  %v541_v13 = vpop.permute.xlu1 %540 }
 0x180   :  { %v366_v5 = vmax.f32 %v342_v1, 0.0  ;;  %v605_v1 = vlaneseq }
 0x181   :  { %v384_v6 = vpack.c.bf16 %v368_v3, %v367_v2  ;;  %701 = vmatpush3.bf16.msra.mxu0 %v382_v55  ;;  %727 = vmatpush3.bf16.msra.mxu1 %v382_v55 }
 0x182   :  { %v383_v7 = vpack.c.bf16 %v366_v5, %v365_v4  ;;  %v606_v4 = vshrl.u32 %v605_v1, 7 }
 0x183   :  { %v546_v14 = vpop.permute.xlu1 %545 }
 0x184   :  { %702 = vmatprep.subr.bf16.mxu0 %v383_v7  ;;  %720 = vmatprep.subr.bf16.mxu1 %v383_v7 }
 0x185   :  { %703 = vmatpush3.bf16.msra.mxu0 %v383_v7  ;;  %728 = vmatpush3.bf16.msra.mxu1 %v383_v7  ;;  %v607_v7 = vsub.s32 0, %v606_v4 }
 0x186   :  { %704 = vmatprep.subr.bf16.mxu0 %v384_v6  ;;  %721 = vmatprep.subr.bf16.mxu1 %v384_v6 }
 0x187   :  { %v416_v15 = vpop.permute.xlu1 %415 }
 0x189   :  { %705 = vmatpush3.bf16.msra.mxu0 %v384_v6  ;;  %729 = vmatpush3.bf16.msra.mxu1 %v384_v6 }
 0x18b   :  { %v551_v16 = vpop.permute.xlu1 %550 }
 0x18c   :  { %707 = vmatmul.mubr.bf16.vlgmr.msra.gmra.mrb[16].mxu0 %v744_v8  ;;  %711 = vmatmul.mubr.bf16.vlgmr.msra.gmra.mrb[0].mxu1 %v745_v9  ;;  %v603_v8 = vpop.permute.xlu0 %602 }
 0x18f   :  { %v421_v17 = vpop.permute.xlu1 %420 }
 0x193   :  { %v556_v18 = vpop.permute.xlu1 %555 }
 0x197   :  { %v426_v19 = vpop.permute.xlu1 %425 }
 0x19b   :  { %v561_v37 = vpop.permute.xlu1 %560 }
 0x19f   :  { %v566_v51 = vpop.permute.xlu1 %565 }
 0x1a3   :  { %v576_v61 = vpop.permute.xlu1 %575 }
 0x25f   :  { %v708_v21 = vpop.f32.mrb[16].mxu0  ;;  %v712_v22 = vpop.f32.mrb[0].mxu1 }
 0x260   :  { %v491_v23 = vpop.f32.mrb[17].mxu0  ;;  %v507_v24 = vpop.f32.mrb[1].mxu1  ;;  %v500_v25 = vadd.f32 %v708_v21, %v406_v11  ;;  %v516_v43 = vadd.f32 %v712_v22, %v426_v19  ;;  %v608_v11 = vrot.slane %v603_v8, %v607_v7 }
 0x261   :  { %v492_v26 = vadd.f32 %v491_v23, %v396_v20  ;;  %v709_v27 = vpop.f32.mrb[18].mxu0  ;;  %v713_v28 = vpop.f32.mrb[2].mxu1  ;;  %v508_v35 = vadd.f32 %v507_v24, %v416_v15 }
 0x262   :  { %v494_v29 = vpop.f32.mrb[19].mxu0  ;;  %v510_v30 = vpop.f32.mrb[3].mxu1  ;;  %v503_v32 = vadd.f32 %v709_v27, %v411_v12  ;;  %v524_v34 = vmax.f32 %v500_v25, 0.0  ;;  %v519_v48 = vadd.f32 %v713_v28, %v431_v46  ;;  %v528_v52 = vmax.f32 %v516_v43, 0.0 }
 0x263   :  { %v522_v31 = vmax.f32 %v492_v26, 0.0  ;;  %v495_v33 = vadd.f32 %v494_v29, %v401_v10  ;;  %v511_v41 = vadd.f32 %v510_v30, %v421_v17  ;;  %v526_v44 = vmax.f32 %v508_v35, 0.0 }
 0x264   :  { %v525_v39 = vmax.f32 %v503_v32, 0.0  ;;  %v580_v42 = vmul.f32 %v551_v16, %v524_v34  ;;  %v529_v55 = vmax.f32 %v519_v48, 0.0  ;;  %v584_v59 = vmul.f32 %v571_v58, %v528_v52 }
 0x265   :  { %v523_v36 = vmax.f32 %v495_v33, 0.0  ;;  %v578_v38 = vmul.f32 %v541_v13, %v522_v31  ;;  %v527_v50 = vmax.f32 %v511_v41, 0.0  ;;  %v582_v53 = vmul.f32 %v561_v37, %v526_v44 }
 0x266   :  { %v581_v47 = vmul.f32 %v556_v18, %v525_v39  ;;  %v585_v62 = vmul.f32 %v576_v61, %v529_v55 }
 0x267   :  { %v579_v40 = vmul.f32 %v546_v14, %v523_v36  ;;  %v583_v56 = vmul.f32 %v566_v51, %v527_v50 }
 0x269   :  { %v586_v45 = vadd.f32 %v579_v40, %v578_v38 }
 0x26b   :  { %v587_v49 = vadd.f32 %v586_v45, %v580_v42 }
 0x26d   :  { %v588_v54 = vadd.f32 %v587_v49, %v581_v47 }
 0x26f   :  { %v589_v57 = vadd.f32 %v588_v54, %v582_v53 }
 0x271   :  { %v590_v60 = vadd.f32 %v589_v57, %v583_v56 }
 0x273   :  { %v591_v63 = vadd.f32 %v590_v60, %v584_v59 }
 0x275   :  { %v592_v0 = vadd.f32 %v591_v63, %v585_v62 }
 0x277   :  { %v593_v2 = vrot.slane %v592_v0, 4 }
 0x279   :  { %v594_v3 = vadd.f32 %v593_v2, %v592_v0 }
 0x27b   :  { %v595_v5 = vrot.slane %v594_v3, 2 }
 0x27d   :  { %v596_v6 = vadd.f32 %v595_v5, %v594_v3 }
 0x27f   :  { %v597_v9 = vrot.slane %v596_v6, 1 }
 0x281   :  { %v598_v10 = vadd.f32 %v597_v9, %v596_v6 }
 0x283   :  { %v609_v12 = vadd.f32 %v608_v11, %v598_v10 }
 0x285   :  { %v610_v13 = vsub.f32 0.0, %v609_v12 }
 0x287   :  { %v611_v14 = vmul.f32 1.442695, %v610_v13 }
 0x289   :  { %746 = vpow2.f32 %v611_v14 }
 0x293   :  { %v747_v15 = vpop.eup %746 }
 0x294   :  { %v613_v16 = vadd.f32 1.0, %v747_v15 }
 0x296   :  { %748 = vrcp.f32 %v613_v16 }
 0x2a0   :  { %v749_v17 = vpop.eup %748 }
 0x2a1   :  { %616 = vst [vmem:[#allocation3] sm:$0x1] %v749_v17 }
 0x2a2   :  { %761 = shalt.err (!%p758_p4)
}
 0x2a3   :  { %s762_s0 = scalar_lea.hbm %s1028_s7, 16 }
 0x2a4   :  { %p763_p5 = scmp.ne.s32.totalorder %s1028_s7, %s762_s0  ;;  %p766_p6 = scmp.lt.u32.totalorder %s762_s0, %s1028_s7 }
 0x2a6   :  { %p768_p7 = pnand %p766_p6, %p763_p5 }
 0x2a8   :  { %771 = shalt.err (!%p768_p7)
}
 0x2a9   :  { %626 = dma.vmem_to_hbm [thread:$0]  %s624_s19, 16, %s1028_s7, [#allocation4]  }
 0x2aa   :  { %772 = dma.done.wait [#allocation4], 16  }
 0x2ab   :  { %773 = vsyncadd [#allocation4], 4294967280 }
 0x2ac   :  { %630 = vsyncpa [#allocation4], 1 }

</bundles_post_ra>
